<compile_context>
chip_gen: v6e
topology: v6e:2x2x1
jax: 0.10.0
libtpu: 0.0.40
codegen_flags: <defaults>
</compile_context>

<pallas_src>
import functools

import jax
import jax.numpy as jnp
from jax import lax
from jax.experimental import pallas as pl
from jax.experimental.pallas import tpu as pltpu


TILE = 128  # one lane-group worth of tokens per in-kernel tile


def _round_up(x, m):
    return (x + m - 1) // m * m


def _cdiv(a, b):
    return -(-a // b)


def _patch_embed_kernel(x_ref, o_ref, *, n_tiles, c_valid):
    """Per grid step (b, j):
         x_ref: (C_blk, n_tiles*128)  channels-major slab of one batch element
                (C_blk = C rounded up to the native sublane multiple; extra
                 rows hold unspecified pad data and are never stored)
         o_ref: (n_tiles*128, C)      tokens-major (transposed) slab
    Pure data movement: one native-dtype XLU transpose per 128-wide tile
    (no MXU, no dtype round-trip -> bit exact for every dtype).
    """
    c_blk = x_ref.shape[0]
    # Static channel chunks of <=128 keep per-iteration vreg pressure bounded
    # even for large embed_dim.
    chunks = [(c0, min(128, c_blk - c0)) for c0 in range(0, c_blk, 128)]

    def body(t, carry):
        start = pl.multiple_of(t * TILE, TILE)
        for c0, cs in chunks:                     # static, usually 1 chunk
            vc = min(c_valid, c0 + cs) - c0       # valid (non-pad) channels
            if vc <= 0:
                continue
            xs = x_ref[c0:c0 + cs, pl.ds(start, TILE)]        # (cs, 128)
            y = jnp.transpose(xs, (1, 0))                     # (128, cs) XLU
            o_ref[pl.ds(start, TILE), c0:c0 + vc] = y[:, :vc]
        return carry

    # fori_loop (not a Python for): bounds live ranges; modest unroll keeps
    # the LLO scheduler fed without blowing up code size at n_tiles=64.
    lax.fori_loop(0, n_tiles, body, 0, unroll=min(8, n_tiles))


def _choose_block_tiles(L, C, itemsize, B, *,
                        cap_tiles=64,
                        vmem_block_budget_bytes=24 * 1024 * 1024):
    """Number of 128-wide token tiles per block (no divisibility requirement).

    The budget covers BOTH pipelined (x2 double-buffered) input and output
    blocks, accounting for the lane padding of the (blk_l, C) output buffer
    (C -> multiple of 128 lanes; with embed_dim=96 that is ~33% VMEM waste
    and masked vst stores) and the sublane padding of the (C, blk_l) input
    buffer.
    """
    n_total = _cdiv(L, TILE)
    sub_mult = max(8, 32 // max(1, itemsize))     # native sublanes: 8/16/32
    c_sub = _round_up(max(C, 1), sub_mult)
    c_lane = _round_up(max(C, 1), 128)
    per_tile = 2 * (c_sub * TILE + TILE * c_lane) * itemsize
    budget_tiles = max(1, vmem_block_budget_bytes // per_tile)
    n_tiles = max(1, min(n_total, cap_tiles, budget_tiles))
    # Keep >=4 grid blocks at small batch so both v7x TensorCores get work
    # (only shrinks blocks when the problem is small anyway).
    wanted_blocks = max(1, _cdiv(4, max(B, 1)))
    if n_total >= wanted_blocks:
        n_tiles = min(n_tiles, max(1, n_total // wanted_blocks))
    return n_tiles


def patch_embed_forward(x):
    """Pallas TPU implementation of PatchEmbed.forward (norm_layer=None)."""
    B, C, H, W = x.shape
    L = H * W
    x2 = x.reshape(B, C, L)          # flatten(2): contiguous, metadata only

    dtype = x.dtype
    itemsize = jnp.dtype(dtype).itemsize
    # TODO(synk): 64-bit dtypes would need a split-into-32-bit-halves path.

    sub_mult = max(8, 32 // max(1, itemsize))
    c_blk = _round_up(C, sub_mult)   # sublane-aligned channel block (>= C)

    n_tiles = _choose_block_tiles(L, C, itemsize, B)
    blk_l = n_tiles * TILE
    n_l_blocks = _cdiv(L, blk_l)     # ragged last block handled by Pallas

    # Explicit scoped-VMEM limit: double-buffered in+out blocks (with lane
    # padding on the output side) plus headroom; raises v5e's 16 MiB default,
    # stays well under v7x's 64 MiB physical VMEM.
    in_block_bytes = c_blk * blk_l * itemsize
    out_block_bytes = blk_l * _round_up(C, 128) * itemsize
    vmem_limit = min(48 * 1024 * 1024,
                     max(16 * 1024 * 1024,
                         2 * (in_block_bytes + out_block_bytes) + (4 << 20)))

    kernel = functools.partial(_patch_embed_kernel, n_tiles=n_tiles, c_valid=C)
    out = pl.pallas_call(
        kernel,
        out_shape=jax.ShapeDtypeStruct((B, L, C), dtype),
        grid=(B, n_l_blocks),
        in_specs=[
            # One (c_blk, blk_l) channels-major slab of batch b per step.
            pl.BlockSpec((None, c_blk, blk_l), lambda b, j: (b, 0, j)),
        ],
        # Full channel dim per output block: contiguous (valid_l * C) HBM
        # writeback.  Note: for embed_dim < 128 (e.g. the default 96) the
        # VMEM-side stores are masked vst (lanes padded to 128); only
        # embed_dim % 128 == 0 gets fully unmasked vst.
        out_specs=pl.BlockSpec((None, blk_l, C), lambda b, j: (b, j, 0)),
        compiler_params=pltpu.CompilerParams(
            dimension_semantics=("parallel", "parallel"),
            vmem_limit_bytes=int(vmem_limit),
        ),
    )(x2)
    # TODO(synk): on v7x, bf16 inputs could pack adjacent element pairs into
    # uint32 via pltpu.bitcast around the transpose to halve XLU tile count.
    return out


class PatchEmbed:
    """Stateless mirror of the PyTorch PatchEmbed (forward pass only)."""

    def __init__(self, img_size=224, patch_size=4, in_chans=3, embed_dim=96,
                 norm_layer=None):
        img_size = (img_size, img_size) if isinstance(img_size, int) else tuple(img_size)
        patch_size = (patch_size, patch_size) if isinstance(patch_size, int) else tuple(patch_size)
        self.img_size = img_size
        self.patch_size = patch_size
        self.patches_resolution = [img_size[0] // patch_size[0],
                                   img_size[1] // patch_size[1]]
        self.num_patches = self.patches_resolution[0] * self.patches_resolution[1]
        self.in_chans = in_chans
        self.embed_dim = embed_dim
        # TODO(synk): optional norm_layer (LayerNorm over embed_dim) is not
        # implemented; only the default norm_layer=None path is supported.
        self.norm = None

    def __call__(self, x):
        return patch_embed_forward(x)

    def flops(self):
        return 0


if __name__ == "__main__":
    key = jax.random.PRNGKey(0)
    k1, k2 = jax.random.split(key)

    def ref_forward(xx):
        bb, cc, hh, ww = xx.shape
        # Pure-JAX mirror of torch: x.flatten(2).transpose(1, 2)
        return jnp.transpose(xx.reshape(bb, cc, hh * ww), (0, 2, 1))

    # Case 1: small toy config (B=2, in_chans=4, 16x16 image) -> (2, 256, 4).
    B, C, H, W = 2, 4, 16, 16
    x = jax.random.normal(k1, (B, C, H, W), dtype=jnp.float32)
    module = PatchEmbed(img_size=16, patch_size=4, in_chans=C, embed_dim=C)
    out = jax.block_until_ready(module(x))
    assert out.shape == (B, H * W, C), out.shape
    assert out.dtype == x.dtype
    assert bool(jnp.array_equal(out, ref_forward(x))), "PatchEmbed mismatch (case 1)"

    # Case 2: embed_dim-sized channel count and a non-128-aligned token count
    # (L = 12*12 = 144 -> ragged last tile, masked tail writeback, no pad/slice).
    B2, C2, H2, W2 = 1, 96, 12, 12
    x2 = jax.random.normal(k2, (B2, C2, H2, W2), dtype=jnp.float32)
    out2 = jax.block_until_ready(patch_embed_forward(x2))
    assert out2.shape == (B2, H2 * W2, C2), out2.shape
    assert bool(jnp.array_equal(out2, ref_forward(x2))), "PatchEmbed mismatch (case 2)"

    print("KERNEL_OK")
</pallas_src>

<mosaic_0001>
module attributes {stable_mosaic.version = 11 : i64} {
  func.func @_patch_embed_kernel(%arg0: i32, %arg1: i32, %arg2: memref<1x8x128xf32, #tpu.memory_space<vmem>>, %arg3: memref<1x128x4xf32, #tpu.memory_space<vmem>>) attributes {dimension_semantics = [#tpu.dimension_semantics<parallel>, #tpu.dimension_semantics<parallel>], iteration_bounds = array<i64: 2, 2>, scalar_prefetch = 0 : i64, scratch_operands = 0 : i64, tpu.core_type = #tpu.core_type<tc>, window_params = [{transform_indices = @transform_0, window_bounds = array<i64: 1, 8, 128>}, {transform_indices = @transform_1, window_bounds = array<i64: 1, 128, 4>}]} {
    %c0_i32 = arith.constant 0 : i32
    %c128_i32 = arith.constant 128 : i32
    %0 = arith.muli %c0_i32, %c128_i32 : i32
    %1 = tpu.assume_multiple %0, 128 : i32
    %c0 = arith.constant 0 : index
    %c0_0 = arith.constant 0 : index
    %2 = arith.index_cast %1 : i32 to index
    %3 = vector.load %arg2[%c0, %c0_0, %2] : memref<1x8x128xf32, #tpu.memory_space<vmem>>, vector<1x8x128xf32>
    %4 = vector.shape_cast %3 : vector<1x8x128xf32> to vector<8x128xf32>
    %5 = tpu.transpose %4, [1, 0] : vector<8x128xf32> -> vector<128x8xf32>
    %6 = vector.extract_strided_slice %5 {offsets = [0, 0], sizes = [128, 4], strides = [1, 1]} : vector<128x8xf32> to vector<128x4xf32>
    %c0_1 = arith.constant 0 : index
    %7 = arith.index_cast %1 : i32 to index
    %c0_2 = arith.constant 0 : index
    %8 = vector.load %arg3[%c0_1, %7, %c0_2] : memref<1x128x4xf32, #tpu.memory_space<vmem>>, vector<1x128x4xf32>
    %9 = vector.shape_cast %8 : vector<1x128x4xf32> to vector<128x4xf32>
    %10 = vector.shape_cast %6 : vector<128x4xf32> to vector<1x128x4xf32>
    tpu.vector_store %arg3[%c0_1, %7, %c0_2], %10 {strides = array<i32>} : memref<1x128x4xf32, #tpu.memory_space<vmem>>, vector<1x128x4xf32>,
    %c1_i32 = arith.constant 1 : i32
    return
  }
  func.func @transform_0(%arg0: i32, %arg1: i32) -> (i32, i32, i32) {
    %c0_i32 = arith.constant 0 : i32
    %c0_i32_0 = arith.constant 0 : i32
    return %arg0, %c0_i32, %arg1 : i32, i32, i32
  }
  func.func @transform_1(%arg0: i32, %arg1: i32) -> (i32, i32, i32) {
    %c0_i32 = arith.constant 0 : i32
    %c0_i32_0 = arith.constant 0 : i32
    return %arg0, %arg1, %c0_i32 : i32, i32, i32
  }
}

</mosaic_0001>

<bundles_post_ra>
// kernel: tpu_custom_call.1
= control target key start
LH: loop header
LB: loop body
LE: loop exit
PB: predicated region body
PF: predicated region fallthrough
CT: control target
= control target key end

     0   :  { %6 = vsyncpa [#allocation3], 0  ;;  %s637_s0 = inlined_call_operand.hbm [shape: f32[2,4,256], index: 0, kind: input, shape index: {}]   ;;  %s638_s1 = inlined_call_operand.vmem [shape: f32[2,256,4], index: 1, kind: output, shape index: {}]  }
   0x1   :  { %8 = vsyncpa [#allocation3 + $0x1], 0  ;;  %s497_s6 = smov 0   ;;  %s499_s7 = smov 0  }
   0x2   :  { %s501_s8 = smov 0   ;;  %s503_s9 = smov 0  }
   0x3   :  { %s505_s10 = smov 0   ;;  %s507_s11 = smov 0  }
   0x4   :  { %s509_s12 = smov 0   ;;  %s511_s13 = smov 0  }
   0x5 LB: > { %s23_s14 = sadd.s32 1, %s473_s11  ;;  %s26_s15 = sadd.s32 1, %s477_s12  ;;  %s481_s13 = sphi %s511_s13, %s14_s13   ;;  %s477_s12 = sphi %s509_s12, %s646_s12   ;;  %s473_s11 = sphi %s507_s11, %s645_s11   ;;  %s469_s10 = sphi %s505_s10, %s644_s10   ;;  %s465_s9 = sphi %s503_s9, %s643_s9   ;;  %s461_s8 = sphi %s501_s8, %s642_s8   ;;  %s457_s7 = sphi %s499_s7, %s641_s7   ;;  %s453_s6 = sphi %s497_s6, %s640_s6  }
   0x6   : > { %p24_p0 = scmp.ge.s32.totalorder %s23_s14, 2  ;;  %s310_s16 = sadd.s32 4294967295, %s481_s13  }
   0x7   : > { %p42_p1 = scmp.ne.s32.totalorder %s461_s8, %s457_s7  ;;  %p43_p2 = scmp.eq.s32.totalorder %s481_s13, 0 }
   0x8   : > { %s648_s14 = smov (%p24_p0, %s23_s14), 0  ;;  %s650_s15 = smov (!%p24_p0, %s26_s15), %s477_s12 }
   0x9   : > { %s31_s17 = ssub.s32 %s473_s11, %s648_s14  ;;  %p28_p3 = scmp.ge.s32.totalorder %s650_s15, 2 }
   0xa   : > { %p48_p4 = scmp.ne.s32.totalorder %s457_s7, %s453_s6  ;;  %p44_p5 = por %p43_p2, %p42_p1 }
   0xb   : > { %p49_p6 = scmp.eq.s32.totalorder %s310_s16, 0  ;;  %s652_s15 = smov (%p28_p3, %s650_s15), 0 }
   0xc   : > { %s30_s19 = ssub.s32 %s477_s12, %s652_s15  ;;  %s35_s21 = sadd.s32 1, %s461_s8 }
   0xd   : > { %p549_p7 = por %p49_p6, %p48_p4  ;;  %s32_s20 = sor.u32 %s31_s17, %s30_s19 }
   0xe   : > { %p33_p8 = scmp.eq.s32.totalorder %s32_s20, 0  ;;  %p313_p9 = scmp.ge.s32.totalorder %s481_s13, 4 }
  0x10   : > { %s557_s22 = scalar_select %p33_p8, %s461_s8, %s35_s21  }
  0x11   : > { %96 = sbr.rel (%p313_p9) target bundleno = 43 (0x2b), region = 16 }
  0x16   : > { %99 = sbr.rel (!%p44_p5) target bundleno = 43 (0x2b), region = 20  ;;  %s100_s23 = sand.u32 (%p44_p5), 1, %s461_s8  }
  0x17   : > { %s314_s24 = sshll.u32 (%p44_p5), %s100_s23, 3  ;;  %s101_s25 = scalar_lea.sflag (%p44_p5), [#allocation3], %s100_s23 }
  0x18   : > { %s104_s26 = scalar_lea.vmem (%p44_p5), [#allocation2], %s314_s24 }
  0x1b   : > { %107 = vsyncadd %s101_s25, 64  ;;  %s315_s27 = sshll.u32 %s477_s12, 1  ;;  %s112_s28 = sshll.u32 %s104_s26, 4  ;;  %s113_s28 = int_to_ptr.vmem [resolvable:$true] %s112_s28 }
  0x1c   : > { %s109_s29 = sadd.s32 %s473_s11, %s315_s27  ;;  %s403_s5 = scalar_lea.vmem %s113_s28, 64 }
  0x1d   : > { %s316_s30 = sshll.u32 %s109_s29, 6  ;;  %p404_p10 = scmp.ne.s32.totalorder %s113_s28, %s403_s5 }
  0x1e   : > { %s111_s4 = scalar_lea.hbm %s637_s0, %s316_s30  ;;  %s483_s6 = smov [#allocation2]  }
  0x1f   : > { %s405_s16 = sshll.u32 %s483_s6, 4  ;;  %s406_s16 = int_to_ptr.vmem [resolvable:$false] %s405_s16 }
  0x20   : > { %s407_s17 = scalar_lea.vmem %s406_s16, 256  ;;  %p408_p11 = scmp.lt.s32.totalorder %s113_s28, %s406_s16 }
  0x21   : > { %p409_p12 = scmp.lt.s32.totalorder %s407_s17, %s403_s5 }
  0x23   : > { %p410_p13 = por %p409_p12, %p408_p11 }
  0x25   : > { %p411_p0 = pnand %p410_p13, %p404_p10 }
  0x27   : > { %414 = shalt.err (!%p411_p0)
}
  0x28   : > { %s484_s19 = smov 128   ;;  %s485_s20 = smov 64  }
  0x29   : > { %s486_s21 = smov 4  }
  0x2a   : > { %118 = dma.hbm_to_vmem [thread:$0]  %s111_s4, 64, %s113_s28, %s101_s25, %s484_s19, %s485_s20, %s486_s21  }
  0x2b PF: > { %p317_p1 = scmp.ge.s32.totalorder %s481_s13, 1  ;;  %p120_p2 = scmp.lt.s32.totalorder %s481_s13, 5 }
  0x2d   : > { %p121_p3 = pnand %p317_p1, %p120_p2 }
  0x2e   : > { %s126_s23 = sand.u32 (!%p121_p3), 1, %s457_s7  }
  0x2f   : > { %124 = sbr.rel (%p121_p3) target bundleno = 240 (0xf0), region = 24  ;;  %s318_s24 = sshll.u32 (!%p121_p3), %s126_s23, 3 }
  0x30   : > { %s127_s26 = scalar_lea.sflag (!%p121_p3), [#allocation3], %s126_s23  ;;  %s130_s27 = scalar_lea.vmem (!%p121_p3), [#allocation2], %s318_s24 }
  0x34   : > { %448 = dma.done.wait (%p549_p7), %s127_s26, 128  }
  0x35   : > { %450 = vsyncadd (%p549_p7), %s127_s26, 4294967168  ;;  %v163_v0 = vld [vmem:[%s130_s27] sm:$0xff]  ;;  %s319_s25 = sshll.u32 %s465_s9, 4  ;;  %p154_p4 = scmp.lt.s32.totalorder %s469_s10, 1  ;;  %vm196_vm0 = vcmask 31744  }
  0x36   : > { %164 = vxpose.xlu0.b32.start.end [1/1] (short) %v163_v0, 128  ;;  %p156_p5 = scmp.lt.s32.totalorder %s319_s25, 31 }
  0x37   : > { %s654_s10 = smov (!%p154_p4, %s469_s10), 1 }
  0x38   : > { %s656_s25 = smov (!%p156_p5, %s319_s25), 31  ;;  %s320_s28 = sshll.u32 %s654_s10, 5 }
  0x39   : > { %s159_s29 = sadd.s32 %s320_s28, %s656_s25 }
  0x3a   : > { %s321_s30 = sshll.u32 %s159_s29, 3 }
  0x3b   : > { %s579_s4 = scalar_lea.vmem %s638_s1, %s321_s30 }
  0xb2   : > { %v180_v1 = vpop.trf.xlu0 }
  0xb3   : > { %197 = vst.msk [vmem:[%s579_s4] sm:$0xff] %vm196_vm0, %v180_v1 }
  0xb6   : > { %v181_v2 = vpop.trf.xlu0 }
  0xb7   : > { %198 = vst.msk [vmem:[%s579_s4 + $0x8] sm:$0xff] %vm196_vm0, %v181_v2 }
  0xba   : > { %v182_v3 = vpop.trf.xlu0 }
  0xbb   : > { %199 = vst.msk [vmem:[%s579_s4 + $0x10] sm:$0xff] %vm196_vm0, %v182_v3 }
  0xbe   : > { %v183_v4 = vpop.trf.xlu0 }
  0xbf   : > { %200 = vst.msk [vmem:[%s579_s4 + $0x18] sm:$0xff] %vm196_vm0, %v183_v4 }
  0xc2   : > { %v184_v5 = vpop.trf.xlu0 }
  0xc3   : > { %201 = vst.msk [vmem:[%s579_s4 + $0x20] sm:$0xff] %vm196_vm0, %v184_v5 }
  0xc6   : > { %v185_v6 = vpop.trf.xlu0 }
  0xc7   : > { %202 = vst.msk [vmem:[%s579_s4 + $0x28] sm:$0xff] %vm196_vm0, %v185_v6 }
  0xca   : > { %v186_v7 = vpop.trf.xlu0 }
  0xcb   : > { %203 = vst.msk [vmem:[%s579_s4 + $0x30] sm:$0xff] %vm196_vm0, %v186_v7 }
  0xce   : > { %v187_v8 = vpop.trf.xlu0 }
  0xcf   : > { %204 = vst.msk [vmem:[%s579_s4 + $0x38] sm:$0xff] %vm196_vm0, %v187_v8 }
  0xd2   : > { %v188_v9 = vpop.trf.xlu0 }
  0xd3   : > { %205 = vst.msk [vmem:[%s579_s4 + $0x40] sm:$0xff] %vm196_vm0, %v188_v9 }
  0xd6   : > { %v189_v10 = vpop.trf.xlu0 }
  0xd7   : > { %206 = vst.msk [vmem:[%s579_s4 + $0x48] sm:$0xff] %vm196_vm0, %v189_v10 }
  0xda   : > { %v190_v11 = vpop.trf.xlu0 }
  0xdb   : > { %207 = vst.msk [vmem:[%s579_s4 + $0x50] sm:$0xff] %vm196_vm0, %v190_v11 }
  0xde   : > { %v191_v12 = vpop.trf.xlu0 }
  0xdf   : > { %208 = vst.msk [vmem:[%s579_s4 + $0x58] sm:$0xff] %vm196_vm0, %v191_v12 }
  0xe2   : > { %v192_v13 = vpop.trf.xlu0 }
  0xe3   : > { %209 = vst.msk [vmem:[%s579_s4 + $0x60] sm:$0xff] %vm196_vm0, %v192_v13 }
  0xe6   : > { %v193_v14 = vpop.trf.xlu0 }
  0xe7   : > { %210 = vst.msk [vmem:[%s579_s4 + $0x68] sm:$0xff] %vm196_vm0, %v193_v14 }
  0xea   : > { %v194_v15 = vpop.trf.xlu0 }
  0xeb   : > { %211 = vst.msk [vmem:[%s579_s4 + $0x70] sm:$0xff] %vm196_vm0, %v194_v15 }
  0xee   : > { %v195_v16 = vpop.trf.xlu0 }
  0xef   : > { %212 = vst.msk [vmem:[%s579_s4 + $0x78] sm:$0xff] %vm196_vm0, %v195_v16 }
  0xf0 PF: > { %s14_s13 = sadd.s32 1, %s481_s13   ;;  %s640_s6 = smov %s457_s7 }
  0xf1   : > { %p11_p6 = scmp.ge.s32.totalorder %s14_s13, 6   ;;  %s641_s7 = smov %s461_s8 }
  0xf2   : > { %s642_s8 = smov %s557_s22  ;;  %s643_s9 = smov %s473_s11 }
  0xf3   : > { %s644_s10 = smov %s477_s12  ;;  %s645_s11 = smov %s648_s14 }
  0xf4   : > { %s646_s12 = smov %s652_s15  ;;  %13 = sbr.rel (!%p11_p6) target bundleno = 5 (0x5), region = 64 }
  0xf9   :  { %243 = vsyncpa [#allocation3], 1 }
  0xfa   :  { %245 = vsyncpa [#allocation3 + $0x1], 1 }

</bundles_post_ra>
